<compile_context>
chip_gen: v7x
topology: tpu7x:2x2x1
jax: 0.10.0
libtpu: 0.0.40
codegen_flags: <defaults>
</compile_context>

<pallas_src>
import functools

import numpy as np
import jax
import jax.numpy as jnp
from jax.experimental import pallas as pl
from jax.experimental.pallas import tpu as pltpu


def _default_padding(kH, kW):
    # torch ConvolutionKernel default: padding = (kH//2-1+kH%2, kH//2, kW//2-1+kW%2, kW//2)
    # consumed by F.pad as (w_left, w_right, h_top, h_bottom). The module uses
    # the kernel's H for the W padding and vice versa (irrelevant for square
    # kernels) -- replicated exactly.
    wl = kH // 2 - 1 + kH % 2
    wr = kH // 2
    ht = kW // 2 - 1 + kW % 2
    hb = kW // 2
    return wl, wr, ht, hb


def _merge_stage_kernels(kernels2d, H, W):
    """Merge per-stage 2D kernels into one equivalent kernel on the union pad grid.

    MultistageConvolutionKernel (inter_process=None) sums the per-stage conv
    outputs; convolution is linear, so the sum equals a single convolution of the
    union-zero-padded image with a combined kernel.
    Returns (K_combined, pad_top, pad_left, Hp, Wp, Hout, Wout).
    """
    stages = []
    for k in kernels2d:
        k = np.asarray(k, np.float32)
        assert k.ndim == 2, "each stage kernel must be 2-D"
        kH, kW = k.shape
        wl, wr, ht, hb = _default_padding(kH, kW)
        stages.append((k, wl, wr, ht, hb))

    houts = {H + s[3] + s[4] - s[0].shape[0] + 1 for s in stages}
    wouts = {W + s[1] + s[2] - s[0].shape[1] + 1 for s in stages}
    assert len(houts) == 1 and len(wouts) == 1, \
        "all stages must produce the same output shape (torch `res += inter`)"
    hout, wout = houts.pop(), wouts.pop()

    max_wl = max(s[1] for s in stages)
    max_wr = max(s[2] for s in stages)
    max_ht = max(s[3] for s in stages)
    max_hb = max(s[4] for s in stages)
    Hp = H + max_ht + max_hb
    Wp = W + max_wl + max_wr
    KH = Hp - hout + 1
    KW = Wp - wout + 1

    K = np.zeros((KH, KW), np.float32)
    for (k, wl, wr, ht, hb) in stages:
        ou = max_ht - ht
        ov = max_wl - wl
        K[ou:ou + k.shape[0], ov:ov + k.shape[1]] += k
    return K, max_ht, max_wl, Hp, Wp, hout, wout


def _conv_sum_kernel(x_ref, o_ref, xp_ref, *, taps, pad_top, pad_left,
                     H, W, Hout, Wout):
    # x_ref : (nb, C, H, W)  raw (unpadded, native dtype) image block
    # o_ref : (nb, Hout, Wout) f32 conv output plane (identical for every out-channel)
    # xp_ref: (nb, Hp, Wp) f32 VMEM scratch = zero-padded, channel-summed image
    xs = jnp.sum(x_ref[...].astype(jnp.float32), axis=1)          # (nb, H, W)

    # In-kernel constant-0 padding (padding_value=0, mode='constant').
    xp_ref[...] = jnp.zeros_like(xp_ref)
    xp_ref[:, pad_top:pad_top + H, pad_left:pad_left + W] = xs
    xp = xp_ref[...]

    # Weighted shift-accumulation with the merged multi-stage kernel. Weights
    # are compile-time constants; zero taps were already dropped.
    acc = jnp.zeros(o_ref.shape, jnp.float32)
    for (u, v, w) in taps:                                        # static unrolled
        acc = acc + w * xp[:, u:u + Hout, v:v + Wout]
    o_ref[...] = acc


def _conv_stages_pallas(img, kernels2d, *, block_bytes=4 << 20):
    """Sum of default-ConvolutionKernel convs of `img` with each 2D kernel.

    Returns the per-filter plane of shape (B, Hout, Wout) in float32 (all
    expanded out-channels of the torch conv are identical to this plane).
    """
    B, C, H, W = img.shape
    K, pad_top, pad_left, Hp, Wp, Hout, Wout = _merge_stage_kernels(kernels2d, H, W)

    taps = [(u, v, float(K[u, v]))
            for u in range(K.shape[0]) for v in range(K.shape[1])
            if float(K[u, v]) != 0.0]
    if not taps:
        return jnp.zeros((B, Hout, Wout), jnp.float32)

    # Block several batch images per grid step (bounded VMEM budget).
    per_img = C * H * W * img.dtype.itemsize + (Hp * Wp + Hout * Wout) * 4
    nb = int(max(1, min(B, block_bytes // max(per_img, 1))))
    grid = (pl.cdiv(B, nb),)
    # TODO(synk): for large images an H-tiled grid axis (with a k-1 row halo)
    # would keep blocks inside v7x's 64 MiB VMEM and feed both TensorCores.

    body = functools.partial(
        _conv_sum_kernel, taps=taps, pad_top=pad_top, pad_left=pad_left,
        H=H, W=W, Hout=Hout, Wout=Wout)

    return pl.pallas_call(
        body,
        out_shape=jax.ShapeDtypeStruct((B, Hout, Wout), jnp.float32),
        grid=grid,
        in_specs=[pl.BlockSpec((nb, C, H, W), lambda n: (n, 0, 0, 0))],
        out_specs=pl.BlockSpec((nb, Hout, Wout), lambda n: (n, 0, 0)),
        scratch_shapes=[pltpu.VMEM((nb, Hp, Wp), jnp.float32)],
        compiler_params=pltpu.CompilerParams(
            dimension_semantics=("parallel",),
            vmem_limit_bytes=32 << 20),
    )(img)


def multistage_convolution_forward(img, kernels, inter_process=None):
    """Equivalent of MultistageConvolutionKernel(kernels, inter_process).forward(img).

    `kernels` is a (list of) 2-D arrays; each is wrapped with the default
    ConvolutionKernel parameters.
    """
    # TODO(synk): only default ConvolutionKernel options are supported in the
    # Pallas path (stride=1, dilation=1, constant zero padding, default padding
    # geometry, conv2d); custom convolution_fn has no Pallas equivalent here.
    if not isinstance(kernels, (list, tuple)):
        kernels = [kernels]
    x = jnp.asarray(img)
    if x.ndim == 2:
        x = x[None, None]
    elif x.ndim == 3:
        x = x[None]
    B = x.shape[0]
    out_channels = B  # torch kernel .expand(B, C, kH, kW) -> conv out_channels == B

    def one_pass(ks):
        plane = _conv_stages_pallas(x, ks)                         # (B, Hout, Wout)
        # All expanded out-channels are identical -> broadcast in the wrapper
        # instead of storing B copies from inside the kernel.
        return jnp.broadcast_to(plane[:, None],
                                (B, out_channels) + plane.shape[1:])

    if inter_process is None:
        # Linear case: all stages merged into a single Pallas conv.
        return one_pass(list(kernels))

    # Non-linear inter_process: faithful per-stage path (one conv per stage).
    res = None
    for k in kernels:
        inter = inter_process(one_pass([k]))
        res = inter if res is None else res + inter
    return res


def _reference(img, kernels2d):
    """Pure-JAX replica of the torch module (per-stage pad + conv2d + sum)."""
    x = jnp.asarray(img)
    if x.ndim == 2:
        x = x[None, None]
    elif x.ndim == 3:
        x = x[None]
    B, C, H, W = x.shape
    res = None
    for k in kernels2d:
        k = jnp.asarray(k, jnp.float32)
        kH, kW = k.shape
        wl, wr, ht, hb = _default_padding(kH, kW)
        xpad = jnp.pad(x, ((0, 0), (0, 0), (ht, hb), (wl, wr))).astype(jnp.float32)
        weight = jnp.broadcast_to(k[None, None], (B, C, kH, kW))
        inter = jax.lax.conv_general_dilated(
            xpad, weight, window_strides=(1, 1), padding="VALID",
            dimension_numbers=("NCHW", "OIHW", "NCHW"))
        res = inter if res is None else res + inter
    return res


if __name__ == "__main__":
    key = jax.random.PRNGKey(0)
    x = jax.random.uniform(key, (2, 4, 16, 16), dtype=jnp.float32)

    # "vertical kernel following horizontal kernel" (module docstring): Sobel pair.
    sobel_x = np.array([[-1., 0., 1.], [-2., 0., 2.], [-1., 0., 1.]], np.float32)
    sobel_y = np.ascontiguousarray(sobel_x.T)

    out = multistage_convolution_forward(x, [sobel_x, sobel_y])
    out = jax.block_until_ready(out)

    assert out.shape == (2, 2, 16, 16), out.shape
    assert out.dtype == jnp.float32, out.dtype

    ref = _reference(x, [sobel_x, sobel_y])
    max_err = float(jnp.max(jnp.abs(out - ref)))
    assert bool(jnp.allclose(out, ref, rtol=1e-4, atol=1e-4)), max_err

    print("KERNEL_OK")
</pallas_src>

<mosaic_0001>
module attributes {stable_mosaic.version = 11 : i64} {
  func.func @_conv_sum_kernel(%arg0: i32, %arg1: memref<2x4x16x16xf32, #tpu.memory_space<vmem>>, %arg2: memref<2x16x16xf32, #tpu.memory_space<vmem>>, %arg3: memref<2x18x18xf32, #tpu.memory_space<vmem>>) attributes {dimension_semantics = [#tpu.dimension_semantics<parallel>], iteration_bounds = array<i64: 1>, scalar_prefetch = 0 : i64, scratch_operands = 1 : i64, tpu.core_type = #tpu.core_type<tc>, window_params = [{transform_indices = @transform_0, window_bounds = array<i64: 2, 4, 16, 16>}, {transform_indices = @transform_1, window_bounds = array<i64: 2, 16, 16>}]} {
    %c0 = arith.constant 0 : index
    %c0_0 = arith.constant 0 : index
    %c0_1 = arith.constant 0 : index
    %c0_2 = arith.constant 0 : index
    %0 = vector.load %arg1[%c0, %c0_0, %c0_1, %c0_2] : memref<2x4x16x16xf32, #tpu.memory_space<vmem>>, vector<2x4x16x16xf32>
    %cst = arith.constant dense<0.000000e+00> : vector<2x16x16xf32>
    %1 = vector.multi_reduction <add>, %0, %cst [1] : vector<2x4x16x16xf32> to vector<2x16x16xf32>
    %cst_3 = arith.constant 0.000000e+00 : f32
    %2 = vector.broadcast %cst_3 : f32 to vector<2x18x18xf32>
    %c0_4 = arith.constant 0 : index
    %c0_5 = arith.constant 0 : index
    %c0_6 = arith.constant 0 : index
    %3 = vector.load %arg3[%c0_4, %c0_5, %c0_6] : memref<2x18x18xf32, #tpu.memory_space<vmem>>, vector<2x18x18xf32>
    tpu.vector_store %arg3[%c0_4, %c0_5, %c0_6], %2 {strides = array<i32>} : memref<2x18x18xf32, #tpu.memory_space<vmem>>, vector<2x18x18xf32>,
    %c0_7 = arith.constant 0 : index
    %c1 = arith.constant 1 : index
    %c1_8 = arith.constant 1 : index
    %4 = vector.load %arg3[%c0_7, %c1, %c1_8] : memref<2x18x18xf32, #tpu.memory_space<vmem>>, vector<2x16x16xf32>
    tpu.vector_store %arg3[%c0_7, %c1, %c1_8], %1 {strides = array<i32>} : memref<2x18x18xf32, #tpu.memory_space<vmem>>, vector<2x16x16xf32>,
    %c0_9 = arith.constant 0 : index
    %c0_10 = arith.constant 0 : index
    %c0_11 = arith.constant 0 : index
    %5 = vector.load %arg3[%c0_9, %c0_10, %c0_11] : memref<2x18x18xf32, #tpu.memory_space<vmem>>, vector<2x18x18xf32>
    %cst_12 = arith.constant 0.000000e+00 : f32
    %6 = vector.broadcast %cst_12 : f32 to vector<2x16x16xf32>
    %7 = vector.extract_strided_slice %5 {offsets = [0, 0, 0], sizes = [2, 16, 16], strides = [1, 1, 1]} : vector<2x18x18xf32> to vector<2x16x16xf32>
    %cst_13 = arith.constant -2.000000e+00 : f32
    %8 = vector.broadcast %cst_13 : f32 to vector<2x16x16xf32>
    %9 = arith.mulf %8, %7 : vector<2x16x16xf32>
    %10 = arith.addf %6, %9 : vector<2x16x16xf32>
    %11 = vector.extract_strided_slice %5 {offsets = [0, 0, 1], sizes = [2, 16, 16], strides = [1, 1, 1]} : vector<2x18x18xf32> to vector<2x16x16xf32>
    %cst_14 = arith.constant -2.000000e+00 : f32
    %12 = vector.broadcast %cst_14 : f32 to vector<2x16x16xf32>
    %13 = arith.mulf %12, %11 : vector<2x16x16xf32>
    %14 = arith.addf %10, %13 : vector<2x16x16xf32>
    %15 = vector.extract_strided_slice %5 {offsets = [0, 1, 0], sizes = [2, 16, 16], strides = [1, 1, 1]} : vector<2x18x18xf32> to vector<2x16x16xf32>
    %cst_15 = arith.constant -2.000000e+00 : f32
    %16 = vector.broadcast %cst_15 : f32 to vector<2x16x16xf32>
    %17 = arith.mulf %16, %15 : vector<2x16x16xf32>
    %18 = arith.addf %14, %17 : vector<2x16x16xf32>
    %19 = vector.extract_strided_slice %5 {offsets = [0, 1, 2], sizes = [2, 16, 16], strides = [1, 1, 1]} : vector<2x18x18xf32> to vector<2x16x16xf32>
    %cst_16 = arith.constant 2.000000e+00 : f32
    %20 = vector.broadcast %cst_16 : f32 to vector<2x16x16xf32>
    %21 = arith.mulf %20, %19 : vector<2x16x16xf32>
    %22 = arith.addf %18, %21 : vector<2x16x16xf32>
    %23 = vector.extract_strided_slice %5 {offsets = [0, 2, 1], sizes = [2, 16, 16], strides = [1, 1, 1]} : vector<2x18x18xf32> to vector<2x16x16xf32>
    %cst_17 = arith.constant 2.000000e+00 : f32
    %24 = vector.broadcast %cst_17 : f32 to vector<2x16x16xf32>
    %25 = arith.mulf %24, %23 : vector<2x16x16xf32>
    %26 = arith.addf %22, %25 : vector<2x16x16xf32>
    %27 = vector.extract_strided_slice %5 {offsets = [0, 2, 2], sizes = [2, 16, 16], strides = [1, 1, 1]} : vector<2x18x18xf32> to vector<2x16x16xf32>
    %cst_18 = arith.constant 2.000000e+00 : f32
    %28 = vector.broadcast %cst_18 : f32 to vector<2x16x16xf32>
    %29 = arith.mulf %28, %27 : vector<2x16x16xf32>
    %30 = arith.addf %26, %29 : vector<2x16x16xf32>
    %c0_19 = arith.constant 0 : index
    %c0_20 = arith.constant 0 : index
    %c0_21 = arith.constant 0 : index
    %31 = vector.load %arg2[%c0_19, %c0_20, %c0_21] : memref<2x16x16xf32, #tpu.memory_space<vmem>>, vector<2x16x16xf32>
    tpu.vector_store %arg2[%c0_19, %c0_20, %c0_21], %30 {strides = array<i32>} : memref<2x16x16xf32, #tpu.memory_space<vmem>>, vector<2x16x16xf32>,
    return
  }
  func.func @transform_0(%arg0: i32) -> (i32, i32, i32, i32) {
    %c0_i32 = arith.constant 0 : i32
    %c0_i32_0 = arith.constant 0 : i32
    %c0_i32_1 = arith.constant 0 : i32
    %c0_i32_2 = arith.constant 0 : i32
    return %arg0, %c0_i32, %c0_i32_0, %c0_i32_1 : i32, i32, i32, i32
  }
  func.func @transform_1(%arg0: i32) -> (i32, i32, i32) {
    %c0_i32 = arith.constant 0 : i32
    %c0_i32_0 = arith.constant 0 : i32
    %c0_i32_1 = arith.constant 0 : i32
    return %arg0, %c0_i32, %c0_i32_0 : i32, i32, i32
  }
}

</mosaic_0001>

<bundles_post_ra>
// kernel: tpu_custom_call.1
= control target key start
LH: loop header
LB: loop body
LE: loop exit
PB: predicated region body
PF: predicated region fallthrough
CT: control target
= control target key end

     0   :  { %6 = vsyncpa [#allocation4], 0  ;;  %s424_s0 = inlined_call_operand.hbm [shape: f32[2,4,16,16], index: 0, kind: input, shape index: {}]   ;;  %s425_s1 = inlined_call_operand.hbm [shape: f32[2,16,16], index: 1, kind: output, shape index: {}]  }
   0x1   :  { %7 = vsyncpa [#allocation5], 0  ;;  %s312_s6 = smov [#allocation3]   ;;  %s264_s10 = scalar_lea.hbm %s424_s0, 2048 }
   0x2   :  { %s13_s7 = sshll.u32 %s312_s6, 4  ;;  %p265_p0 = scmp.ne.s32.totalorder %s424_s0, %s264_s10  ;;  %s14_s7 = int_to_ptr.vmem [resolvable:$true] %s13_s7 }
   0x3   :  { %p268_p1 = scmp.lt.u32.totalorder %s264_s10, %s424_s0 }
   0x5   :  { %p270_p2 = pnand %p268_p1, %p265_p0 }
   0x7   :  { %273 = shalt.err (!%p270_p2)
}
   0x8   :  { %s274_s15 = scalar_lea.vmem %s14_s7, 2048  ;;  %p279_p4 = scmp.lt.s32.totalorder %s14_s7, %s14_s7 }
   0x9   :  { %p275_p3 = scmp.ne.s32.totalorder %s14_s7, %s274_s15  ;;  %p280_p5 = scmp.lt.s32.totalorder %s274_s15, %s274_s15 }
   0xb   :  { %p281_p6 = por %p280_p5, %p279_p4 }
   0xd   :  { %p282_p7 = pnand %p281_p6, %p275_p3 }
   0xf   :  { %285 = shalt.err (!%p282_p7)
}
  0x10   :  { %s313_s16 = smov 128   ;;  %s314_s17 = smov 8  }
  0x11   :  { %19 = dma.hbm_to_vmem [thread:$0]  %s424_s0, 2048, %s14_s7, [#allocation4], %s313_s16, %s313_s16, %s314_s17  }
  0x12   :  { %308 = dma.done.wait [#allocation4], 2048  }
  0x13   :  { %309 = vsyncadd [#allocation4], 4294965248  ;;  %vm68_vm0 = vcmask 146432   ;;  %v315_v0 = vmov 0.0   ;;  %vm71_vm1 = vcmask 140288   ;;  %vm39_vm2 = vcmask 130048  }
  0x14   :  { %73 = vst.msk [vmem:[#allocation2 + $0x18] sm:$0xff] %vm68_vm0, %v315_v0  ;;  %74 = vst.msk [vmem:[#allocation2 + $0x20] sm:$0xff] %vm68_vm0, %v315_v0  ;;  %v31_v1 = vld [vmem:[#allocation3 + $0x40] sm:$0xff]  ;;  %v33_v2 = vld [vmem:[#allocation3 + $0x50] sm:$0xff]  ;;  %s316_s0 = smov 1   ;;  %vm92_vm3 = vcmask 138248  }
  0x15   :  { %69 = vst.msk [vmem:[#allocation2] sm:$0xff] %vm68_vm0, %v315_v0  ;;  %70 = vst.msk [vmem:[#allocation2 + $0x8] sm:$0xff] %vm68_vm0, %v315_v0  ;;  %v35_v3 = vld [vmem:[#allocation3 + $0x60] sm:$0xff]  ;;  %v37_v4 = vld [vmem:[#allocation3 + $0x70] sm:$0xff]  ;;  %v54_v5 = vsel %vm39_vm2, %v31_v1, 0.0  ;;  %v55_v6 = vsel %vm39_vm2, %v33_v2, 0.0 }
  0x16   :  { %75 = vst.msk [vmem:[#allocation2 + $0x28] sm:$0x3] %vm71_vm1, %v315_v0  ;;  %72 = vst.msk [vmem:[#allocation2 + $0x10] sm:$0x3] %vm71_vm1, %v315_v0  ;;  %v57_v7 = vsel %vm39_vm2, %v35_v3, 0.0  ;;  %v23_v8 = vld [vmem:[#allocation3] sm:$0xff]  ;;  %v56_v10 = vadd.f32 %v55_v6, %v54_v5 }
  0x17   :  { %v25_v9 = vld [vmem:[#allocation3 + $0x10] sm:$0xff]  ;;  %v27_v11 = vld [vmem:[#allocation3 + $0x20] sm:$0xff]  ;;  %v40_v13 = vsel %vm39_vm2, %v23_v8, 0.0  ;;  %v32_v15 = vld [vmem:[#allocation3 + $0x48] sm:$0xff]  ;;  %v59_v16 = vsel %vm39_vm2, %v37_v4, 0.0  ;;  %s317_s20 = smov 127  }
  0x18   :  { %v29_v12 = vld [vmem:[#allocation3 + $0x30] sm:$0xff]  ;;  %v41_v14 = vsel %vm39_vm2, %v25_v9, 0.0  ;;  %v43_v18 = vsel %vm39_vm2, %v27_v11, 0.0  ;;  %v34_v19 = vld [vmem:[#allocation3 + $0x58] sm:$0xff]  ;;  %v36_v20 = vld [vmem:[#allocation3 + $0x68] sm:$0xff]  ;;  %v61_v22 = vsel %vm39_vm2, %v32_v15, 0.0  ;;  %v58_v23 = vadd.f32 %v57_v7, %v56_v10 }
  0x19   :  { %v42_v17 = vadd.f32 %v41_v14, %v40_v13  ;;  %v38_v21 = vld [vmem:[#allocation3 + $0x78] sm:$0xff]  ;;  %v45_v24 = vsel %vm39_vm2, %v29_v12, 0.0  ;;  %v62_v25 = vsel %vm39_vm2, %v34_v19, 0.0  ;;  %v64_v26 = vsel %vm39_vm2, %v36_v20, 0.0  ;;  %v24_v27 = vld [vmem:[#allocation3 + $0x8] sm:$0xff]  ;;  %s318_s21 = smov 126  }
  0x1a   :  { %v26_v28 = vld [vmem:[#allocation3 + $0x18] sm:$0xff]  ;;  %v28_v29 = vld [vmem:[#allocation3 + $0x28] sm:$0xff]  ;;  %v63_v31 = vadd.f32 %v62_v25, %v61_v22  ;;  %v47_v33 = vsel %vm39_vm2, %v24_v27, 0.0  ;;  %v60_v35 = vadd.f32 %v59_v16, %v58_v23  ;;  %v66_v36 = vsel %vm39_vm2, %v38_v21, 0.0  ;;  %s319_s22 = smov [#allocation6]  }
  0x1b   :  { %v44_v30 = vadd.f32 %v43_v18, %v42_v17  ;;  %v30_v32 = vld [vmem:[#allocation3 + $0x38] sm:$0xff]  ;;  %v48_v34 = vsel %vm39_vm2, %v26_v28, 0.0  ;;  %v50_v38 = vsel %vm39_vm2, %v28_v29, 0.0  ;;  %vm135_vm4 = vcmask 1046528   ;;  %s244_s23 = sshll.u32 %s319_s22, 4  ;;  %s245_s23 = int_to_ptr.vmem [resolvable:$true] %s244_s23 }
  0x1c   :  { %v49_v37 = vadd.f32 %v48_v34, %v47_v33  ;;  %v65_v40 = vadd.f32 %v64_v26, %v63_v31  ;;  %v52_v41 = vsel %vm39_vm2, %v30_v32, 0.0  ;;  %84 = vrot.lane.b32.xlu1 %v60_v35, %s316_s0  ;;  %vm192_vm5 = vcmask 1045504   ;;  %s286_s24 = scalar_lea.vmem %s245_s23, 512  ;;  %p291_p9 = scmp.lt.s32.totalorder %s245_s23, %s245_s23 }
  0x1d   :  { %v46_v39 = vadd.f32 %v45_v24, %v44_v30  ;;  %p287_p8 = scmp.ne.s32.totalorder %s245_s23, %s286_s24  ;;  %p292_p10 = scmp.lt.s32.totalorder %s286_s24, %s286_s24 }
  0x1e   :  { %v51_v42 = vadd.f32 %v50_v38, %v49_v37  ;;  %v67_v43 = vadd.f32 %v66_v36, %v65_v40 }
  0x1f   :  { %80 = vrot.lane.b32.xlu0 %v46_v39, %s316_s0  ;;  %p293_p11 = por %p292_p10, %p291_p9 }
  0x20   :  { %v53_v44 = vadd.f32 %v52_v41, %v51_v42  ;;  %86 = vrot.lane.b32.xlu1 %v67_v43, %s316_s0 }
  0x21   :  { %p294_p12 = pnand %p293_p11, %p287_p8 }
  0x23   :  { %82 = vrot.lane.b32.xlu0 %v53_v44, %s316_s0 }
  0x8e   :  { %v85_v45 = vpop.permute.xlu1 %84 }
  0x8f   :  { %95 = vst.msk [vmem:[#allocation2 + $0x19] sm:$0xff] %vm92_vm3, %v85_v45 }
  0x91   :  { %v81_v46 = vpop.permute.xlu0 %80 }
  0x92   :  { %93 = vst.msk [vmem:[#allocation2 + $0x1] sm:$0xff] %vm92_vm3, %v81_v46  ;;  %v87_v47 = vpop.permute.xlu1 %86 }
  0x93   :  { %96 = vst.msk [vmem:[#allocation2 + $0x21] sm:$0xff] %vm92_vm3, %v87_v47 }
  0x95   :  { %v83_v48 = vpop.permute.xlu0 %82 }
  0x96   :  { %94 = vst.msk [vmem:[#allocation2 + $0x9] sm:$0xff] %vm92_vm3, %v83_v48  ;;  %v100_v50 = vld [vmem:[#allocation2 + $0x18] sm:$0xff] }
  0x97   :  { %v365_v53 = vmul.f32 -2.0, %v100_v50  ;;  %v157_v55 = vmul.f32 2.0, %v100_v50 }
  0x99   :  { %v97_v49 = vld [vmem:[#allocation2] sm:$0xff]  ;;  %v171_v3 = vrot.slane %v157_v55, 1  ;;  %v198_v20 = vrot.slane %v157_v55, 2  ;;  %v141_v41 = vrot.slane %v365_v53, 1 }
  0x9a   :  { %v361_v51 = vmul.f32 -2.0, %v97_v49  ;;  %v154_v52 = vmul.f32 2.0, %v97_v49  ;;  %v101_v54 = vld [vmem:[#allocation2 + $0x20] sm:$0xff]  ;;  %v102_v63 = vld [vmem:[#allocation2 + $0x28] sm:$0x3] }
  0x9b   :  { %v158_v60 = vmul.f32 2.0, %v101_v54  ;;  %v369_v62 = vmul.f32 -2.0, %v101_v54  ;;  %v159_v7 = vmul.f32 2.0, %v102_v63  ;;  %v132_v11 = vmul.f32 -2.0, %v102_v63 }
  0x9c   :  { %115 = vrot.lane.b32.xlu0 %v361_v51, %s317_s20  ;;  %v166_v1 = vrot.slane %v154_v52, 1  ;;  %v193_v19 = vrot.slane %v154_v52, 2  ;;  %v136_v37 = vrot.slane %v361_v51, 1 }
  0x9d   :  { %v98_v56 = vld [vmem:[#allocation2 + $0x8] sm:$0xff]  ;;  %v99_v57 = vld [vmem:[#allocation2 + $0x10] sm:$0x3]  ;;  %v172_v5 = vrot.slane %v158_v60, 1  ;;  %v142_v10 = vrot.slane %v369_v62, 1  ;;  %v144_v13 = vrot.slane %v132_v11, 1 }
  0x9e   :  { %v367_v58 = vmul.f32 -2.0, %v98_v56  ;;  %v155_v59 = vmul.f32 2.0, %v98_v56  ;;  %v156_v61 = vmul.f32 2.0, %v99_v57  ;;  %v131_v0 = vmul.f32 -2.0, %v99_v57 }
  0x9f   :  { %v174_v14 = vrot.slane %v159_v7, 1  ;;  %v173_v15 = vsel %vm135_vm4, %v171_v3, %v172_v5  ;;  %v145_v18 = vsel %vm135_vm4, %v142_v10, %v144_v13  ;;  %v199_v23 = vrot.slane %v158_v60, 2 }
  0xa0   :  { %119 = vrot.lane.b32.xlu0 %v365_v53, %s317_s20  ;;  %117 = vrot.lane.b32.xlu1 %v367_v58, %s317_s20  ;;  %v167_v2 = vrot.slane %v155_v59, 1  ;;  %v169_v6 = vrot.slane %v156_v61, 1  ;;  %v137_v8 = vrot.slane %v367_v58, 1  ;;  %v139_v9 = vrot.slane %v131_v0, 1 }
  0xa1   :  { %v194_v17 = vrot.slane %v155_v59, 2  ;;  %v175_v22 = vsel %vm135_vm4, %v172_v5, %v174_v14  ;;  %v196_v24 = vrot.slane %v156_v61, 2  ;;  %v200_v25 = vsel %vm192_vm5, %v198_v20, %v199_v23 }
  0xa2   :  { %v168_v4 = vsel %vm135_vm4, %v166_v1, %v167_v2  ;;  %v140_v12 = vsel %vm135_vm4, %v137_v8, %v139_v9  ;;  %v170_v16 = vsel %vm135_vm4, %v167_v2, %v169_v6  ;;  %v201_v27 = vrot.slane %v159_v7, 2 }
  0xa3   :  { %v195_v21 = vsel %vm192_vm5, %v193_v19, %v194_v17  ;;  %v197_v26 = vsel %vm192_vm5, %v194_v17, %v196_v24  ;;  %v138_v40 = vsel %vm135_vm4, %v136_v37, %v137_v8  ;;  %v143_v48 = vsel %vm135_vm4, %v141_v41, %v142_v10 }
  0xa4   :  { %176 = vrot.lane.b32.xlu0 %v168_v4, %s318_s21  ;;  %121 = vrot.lane.b32.xlu1 %v369_v62, %s317_s20  ;;  %v202_v28 = vsel %vm192_vm5, %v199_v23, %v201_v27 }
  0xa8   :  { %180 = vrot.lane.b32.xlu0 %v173_v15, %s318_s21  ;;  %178 = vrot.lane.b32.xlu1 %v170_v16, %s318_s21 }
  0xac   :  { %203 = vrot.lane.b32.xlu0 %v195_v21, %s317_s20  ;;  %182 = vrot.lane.b32.xlu1 %v175_v22, %s318_s21 }
  0xb0   :  { %207 = vrot.lane.b32.xlu0 %v200_v25, %s317_s20  ;;  %205 = vrot.lane.b32.xlu1 %v197_v26, %s317_s20 }
  0xb4   :  { %219 = vrot.lane.b32.xlu0 %v195_v21, %s318_s21  ;;  %209 = vrot.lane.b32.xlu1 %v202_v28, %s317_s20 }
  0xb8   :  { %223 = vrot.lane.b32.xlu0 %v200_v25, %s318_s21  ;;  %221 = vrot.lane.b32.xlu1 %v197_v26, %s318_s21 }
  0xbc   :  { %225 = vrot.lane.b32.xlu1 %v202_v28, %s318_s21 }
 0x10e   :  { %v116_v29 = vpop.permute.xlu0 %115 }
 0x10f   :  { %v127_v36 = vadd.f32 %v116_v29, %v361_v51 }
 0x111   :  { %v150_v44 = vadd.f32 %v138_v40, %v127_v36 }
 0x112   :  { %v118_v30 = vpop.permute.xlu1 %117  ;;  %v120_v31 = vpop.permute.xlu0 %119 }
 0x113   :  { %v128_v42 = vadd.f32 %v118_v30, %v367_v58  ;;  %v129_v43 = vadd.f32 %v120_v31, %v365_v53 }
 0x115   :  { %v151_v50 = vadd.f32 %v140_v12, %v128_v42  ;;  %v152_v51 = vadd.f32 %v143_v48, %v129_v43 }
 0x116   :  { %v122_v32 = vpop.permute.xlu1 %121  ;;  %v177_v33 = vpop.permute.xlu0 %176 }
 0x117   :  { %v188_v47 = vadd.f32 %v177_v33, %v150_v44  ;;  %v130_v49 = vadd.f32 %v122_v32, %v369_v62 }
 0x119   :  { %v153_v60 = vadd.f32 %v145_v18, %v130_v49 }
 0x11a   :  { %v179_v34 = vpop.permute.xlu1 %178  ;;  %v181_v35 = vpop.permute.xlu0 %180 }
 0x11b   :  { %v189_v56 = vadd.f32 %v179_v34, %v151_v50  ;;  %v190_v57 = vadd.f32 %v181_v35, %v152_v51 }
 0x11e   :  { %v183_v38 = vpop.permute.xlu1 %182  ;;  %v204_v39 = vpop.permute.xlu0 %203 }
 0x11f   :  { %v215_v52 = vadd.f32 %v204_v39, %v188_v47  ;;  %v191_v0 = vadd.f32 %v183_v38, %v153_v60 }
 0x122   :  { %v206_v45 = vpop.permute.xlu1 %205  ;;  %v208_v46 = vpop.permute.xlu0 %207 }
 0x123   :  { %v216_v58 = vadd.f32 %v206_v45, %v189_v56  ;;  %v217_v61 = vadd.f32 %v208_v46, %v190_v57 }
 0x126   :  { %v210_v54 = vpop.permute.xlu1 %209  ;;  %v220_v55 = vpop.permute.xlu0 %219 }
 0x127   :  { %v231_v59 = vadd.f32 %v220_v55, %v215_v52  ;;  %v218_v62 = vadd.f32 %v210_v54, %v191_v0 }
 0x129   :  { %235 = vst.msk [vmem:[#allocation6] sm:$0xff] %vm39_vm2, %v231_v59 }
 0x12a   :  { %v222_v53 = vpop.permute.xlu1 %221  ;;  %v224_v63 = vpop.permute.xlu0 %223 }
 0x12b   :  { %v232_v1 = vadd.f32 %v222_v53, %v216_v58  ;;  %v233_v2 = vadd.f32 %v224_v63, %v217_v61 }
 0x12d   :  { %236 = vst.msk [vmem:[#allocation6 + $0x8] sm:$0xff] %vm39_vm2, %v232_v1  ;;  %237 = vst.msk [vmem:[#allocation6 + $0x10] sm:$0xff] %vm39_vm2, %v233_v2 }
 0x12e   :  { %v226_v3 = vpop.permute.xlu1 %225 }
 0x12f   :  { %v234_v4 = vadd.f32 %v226_v3, %v218_v62 }
 0x131   :  { %238 = vst.msk [vmem:[#allocation6 + $0x18] sm:$0xff] %vm39_vm2, %v234_v4 }
 0x132   :  { %297 = shalt.err (!%p294_p12)
}
 0x133   :  { %s298_s27 = scalar_lea.hbm %s425_s1, 512 }
 0x134   :  { %p299_p13 = scmp.ne.s32.totalorder %s425_s1, %s298_s27  ;;  %p302_p0 = scmp.lt.u32.totalorder %s298_s27, %s425_s1 }
 0x136   :  { %p304_p1 = pnand %p302_p0, %p299_p13 }
 0x138   :  { %307 = shalt.err (!%p304_p1)
}
 0x139   :  { %250 = dma.vmem_to_hbm [thread:$0]  %s245_s23, 512, %s425_s1, [#allocation5], %s313_s16, %s313_s16, %s314_s17  }
 0x13a   :  { %310 = dma.done.wait [#allocation5], 512  }
 0x13b   :  { %311 = vsyncadd [#allocation5], 4294966784 }
 0x13c   :  { %254 = vsyncpa [#allocation4], 1 }
 0x13d   :  { %255 = vsyncpa [#allocation5], 1 }

</bundles_post_ra>
